<compile_context>
chip_gen: v6e
topology: v6e:2x2x1
jax: 0.10.0
libtpu: 0.0.40
codegen_flags: <defaults>
</compile_context>

<pallas_src>
import jax
import jax.numpy as jnp
import numpy as np
from jax.experimental import pallas as pl
from jax.experimental.pallas import tpu as pltpu

LAYER_NORM_EPS = 1e-12
SIGMA_INIT = 50.0
W_INIT = 10.0


# ---------------------------------------------------------------------------
# Kernel
# ---------------------------------------------------------------------------
def bert_embeddings_kernel(x_ref, postok_ref, mbo_ref, am_ref,
                           gamma_ref, beta_ref, out_ref):
    """Processes `Bb = x_ref.shape[0]` batch rows per grid step.

    x_ref      : VMEM (Bb, S, H) bf16 -> inputs_embeds (= word + entity)
    postok_ref : VMEM (S, H)     f32  -> position + token-type embeddings (resident)
    mbo_ref    : VMEM (B, S)     f32  -> precomputed MGP_SWD_ weights (resident)
    am_ref     : VMEM (B, S)     f32  -> aspect masks (resident)
    gamma_ref  : VMEM (1, H)     f32  -> LayerNorm weight
    beta_ref   : VMEM (1, H)     f32  -> LayerNorm bias
    out_ref    : VMEM (Bb, S, H) f32  -> final embeddings
    """
    bb = x_ref.shape[0]
    r0 = pl.multiple_of(pl.program_id(0) * bb, bb)

    # inputs_embeds + (token_type + position) embeddings, all math in f32.
    emb = x_ref[...].astype(jnp.float32) + postok_ref[...][None, :, :]   # (Bb,S,H)

    # Per-row MGP_SWD_ weights and aspect masks (sliced from the resident
    # lane-dense (B, S) arrays).
    mbo = mbo_ref[pl.ds(r0, bb), :]                                      # (Bb,S)
    am = am_ref[pl.ds(r0, bb), :]                                        # (Bb,S)

    # feature_embedding_bo = M_Bo @ x  -> VPU multiply + sublane (XLU) reduce
    # (avoids an M=1 MXU matvec on the critical path).
    feat = jnp.sum(mbo[:, :, None] * emb, axis=1, keepdims=True)         # (Bb,1,H)

    # x = x + aspect_masks[:, :, None] @ feature_embedding_bo (rank-1 update).
    emb = emb + am[:, :, None] * feat                                    # (Bb,S,H)

    # --- LayerNorm over hidden dim: two-pass stats, biased variance ---
    h = emb.shape[-1]
    mean = jnp.sum(emb, axis=-1, keepdims=True) * (1.0 / h)
    c = emb - mean
    var = jnp.sum(c * c, axis=-1, keepdims=True) * (1.0 / h)
    inv = jax.lax.rsqrt(var + LAYER_NORM_EPS)
    out_ref[...] = (c * inv * gamma_ref[...] + beta_ref[...]).astype(out_ref.dtype)


# ---------------------------------------------------------------------------
# Block sizing helpers
# ---------------------------------------------------------------------------
def _round_up(x, m):
    return ((x + m - 1) // m) * m


def _vmem_bytes_estimate(block_rows, batch, seq, hidden):
    """Rough double-buffered VMEM footprint for one grid step (bytes)."""
    hp = _round_up(hidden, 128)
    sp = _round_up(seq, 128)
    stream = block_rows * seq * hp * (2 + 4)           # bf16 in + f32 out per step
    resident = (seq * hp * 4                           # pos+type embeddings (f32)
                + 2 * 8 * hp * 4                       # LN gamma, beta
                + 2 * _round_up(batch, 8) * sp * 4)    # m_bo + aspect masks
    return 2 * stream + resident                       # double-buffered streams


def _pick_block_rows(batch, seq, hidden, max_rows=16, budget_bytes=40 << 20):
    """Largest divisor of `batch` whose tiles fit the VMEM budget; prefer
    leaving >= 2 grid steps so both v7x TensorCores get work."""
    fits = [bb for bb in range(1, min(batch, max_rows) + 1)
            if batch % bb == 0
            and _vmem_bytes_estimate(bb, batch, seq, hidden) <= budget_bytes]
    if not fits:
        return 1
    multi_step = [bb for bb in fits if batch // bb >= 2]
    return max(multi_step) if multi_step else max(fits)


# ---------------------------------------------------------------------------
# Forward wrapper
# ---------------------------------------------------------------------------
def bert_embeddings_forward(input_ids, word_table, entity_table, pos_table,
                            type_table, gamma, beta, index, aspect_masks,
                            *, activation_dtype=jnp.bfloat16, block_rows=None):
    """Returns (embeddings, entity_embedding, inputs_embeds), like the module."""
    B, S = input_ids.shape
    H = word_table.shape[1]

    # --- plain-JAX glue: embedding gathers (module also returns these) ---
    # inputs_embeds = word + entity; gather once from the pre-summed table
    # (bit-identical to gather + gather + add, but one fewer (B,S,H) pass).
    entity_emb = jnp.take(entity_table, input_ids, axis=0)               # (B,S,H) f32
    inputs_embeds = jnp.take(word_table + entity_table, input_ids, axis=0)

    # token_type_ids are all zeros in this path -> fold the single token-type
    # row into the (small, resident, f32) position-embedding slab.
    pos_tok = (pos_table[:S] + type_table[0][None, :]).astype(jnp.float32)  # (S,H)

    # --- MGP_SWD_.Bo weights precomputed lane-dense (mu=index, sigma=50, W=10) ---
    positions = jnp.arange(S, dtype=jnp.float32)[None, :]                # (1,S)
    a = jnp.abs(positions - index.astype(jnp.float32))                   # (B,S)
    a0 = jnp.exp(-(a * a) / (2.0 * SIGMA_INIT))
    bo = jnp.sin(W_INIT * a + 3.14 / 2.0) + 1.0
    m_bo = (a0 * bo / 2.0).astype(jnp.float32)                           # (B,S)

    am = aspect_masks.astype(jnp.float32)                                # (B,S)

    if block_rows is None:
        block_rows = _pick_block_rows(B, S, H)
    assert B % block_rows == 0, "block_rows must divide the batch size"

    # bf16 storage for the streamed activations (f32 math inside the kernel).
    x_act = inputs_embeds.astype(activation_dtype)                       # (B,S,H)

    est = _vmem_bytes_estimate(block_rows, B, S, H)
    vmem_limit = int(min(56 << 20, max(24 << 20, 1.4 * est)))            # v7x headroom

    out = pl.pallas_call(
        bert_embeddings_kernel,
        out_shape=jax.ShapeDtypeStruct((B, S, H), jnp.float32),
        grid_spec=pltpu.PrefetchScalarGridSpec(
            num_scalar_prefetch=0,
            grid=(B // block_rows,),
            in_specs=[
                pl.BlockSpec((block_rows, S, H), lambda b: (b, 0, 0)),  # inputs
                pl.BlockSpec((S, H), lambda b: (0, 0)),                 # pos+type (resident)
                pl.BlockSpec((B, S), lambda b: (0, 0)),                 # m_bo (resident)
                pl.BlockSpec((B, S), lambda b: (0, 0)),                 # aspect masks
                pl.BlockSpec((1, H), lambda b: (0, 0)),                 # LN gamma
                pl.BlockSpec((1, H), lambda b: (0, 0)),                 # LN beta
            ],
            out_specs=pl.BlockSpec((block_rows, S, H), lambda b: (b, 0, 0)),
        ),
        compiler_params=pltpu.CompilerParams(
            dimension_semantics=("parallel",),
            vmem_limit_bytes=vmem_limit),
    )(x_act, pos_tok, m_bo, am, gamma[None, :], beta[None, :])

    # Dropout: identity (inference mode).
    return out, entity_emb, inputs_embeds


# ---------------------------------------------------------------------------
# Pure-JAX reference (mirrors the PyTorch forward)
# ---------------------------------------------------------------------------
def reference_forward(input_ids, word_table, entity_table, pos_table,
                      type_table, gamma, beta, index, aspect_masks,
                      activation_dtype=jnp.float32):
    """Pure-JAX mirror of the PyTorch forward.  `activation_dtype` lets the
    reference quantize the streamed inputs_embeds the same way the kernel's
    storage dtype does (f32 = exact module semantics)."""
    B, S = input_ids.shape
    word_emb = word_table[input_ids]
    entity_emb = entity_table[input_ids]
    inputs_embeds = word_emb + entity_emb

    x = inputs_embeds.astype(activation_dtype).astype(jnp.float32)
    emb = x + (pos_table[:S] + type_table[0][None, :])[None]

    positions = jnp.arange(S, dtype=jnp.float32)[None, :]                # (1,S)
    a = jnp.abs(positions - index)                                       # (B,S)
    a0 = jnp.exp(-(a * a) / (2.0 * SIGMA_INIT))
    bo = jnp.sin(W_INIT * a + 3.14 / 2.0) + 1.0
    m_bo = a0 * bo / 2.0                                                 # (B,S)

    feat = jnp.einsum('bs,bsh->bh', m_bo, emb)                           # (B,H)
    emb = emb + aspect_masks.astype(jnp.float32)[..., None] * feat[:, None, :]

    mean = emb.mean(-1, keepdims=True)
    var = ((emb - mean) ** 2).mean(-1, keepdims=True)
    out = (emb - mean) / jnp.sqrt(var + LAYER_NORM_EPS) * gamma + beta
    return out, entity_emb, inputs_embeds


if __name__ == "__main__":
    B, S, H = 4, 8, 128
    VOCAB, MAX_POS, TYPE_VOCAB = 50, 64, 2

    key = jax.random.PRNGKey(0)
    keys = jax.random.split(key, 8)

    word_table = jax.random.normal(keys[0], (VOCAB, H), jnp.float32) * 0.02
    entity_table = jax.random.normal(keys[1], (VOCAB, H), jnp.float32) * 0.02
    pos_table = jax.random.normal(keys[2], (MAX_POS, H), jnp.float32) * 0.02
    type_table = jax.random.normal(keys[3], (TYPE_VOCAB, H), jnp.float32) * 0.02
    gamma = jnp.ones((H,), jnp.float32)
    beta = jnp.zeros((H,), jnp.float32)

    input_ids = jax.random.randint(keys[4], (B, S), 0, VOCAB)
    index = jax.random.uniform(keys[5], (B, 1), jnp.float32, 0.0, float(S))
    aspect_masks = (jax.random.uniform(keys[6], (B, S)) < 0.5).astype(jnp.float32)

    out, entity_emb, inputs_embeds = bert_embeddings_forward(
        input_ids, word_table, entity_table, pos_table, type_table,
        gamma, beta, index, aspect_masks)
    jax.block_until_ready(out)

    # Reference with matching bf16 activation storage -> tight tolerance.
    ref_out, ref_entity, ref_inputs = reference_forward(
        input_ids, word_table, entity_table, pos_table, type_table,
        gamma, beta, index, aspect_masks, activation_dtype=jnp.bfloat16)
    np.testing.assert_allclose(np.asarray(out), np.asarray(ref_out),
                               rtol=1e-4, atol=1e-4)

    # Sanity check against exact f32 module semantics (bounds the bf16
    # storage error, which only affects the streamed activations).
    f32_out, _, _ = reference_forward(
        input_ids, word_table, entity_table, pos_table, type_table,
        gamma, beta, index, aspect_masks, activation_dtype=jnp.float32)
    np.testing.assert_allclose(np.asarray(out), np.asarray(f32_out),
                               rtol=5e-2, atol=5e-2)

    np.testing.assert_allclose(np.asarray(entity_emb), np.asarray(ref_entity),
                               rtol=1e-6, atol=1e-6)
    np.testing.assert_allclose(np.asarray(inputs_embeds), np.asarray(ref_inputs),
                               rtol=1e-6, atol=1e-6)
    print("KERNEL_OK")
</pallas_src>

<mosaic_0001>
module attributes {stable_mosaic.version = 11 : i64} {
  func.func @bert_embeddings_kernel(%arg0: i32, %arg1: memref<2x8x128xbf16, #tpu.memory_space<vmem>>, %arg2: memref<8x128xf32, #tpu.memory_space<vmem>>, %arg3: memref<4x8xf32, #tpu.memory_space<vmem>>, %arg4: memref<4x8xf32, #tpu.memory_space<vmem>>, %arg5: memref<1x128xf32, #tpu.memory_space<vmem>>, %arg6: memref<1x128xf32, #tpu.memory_space<vmem>>, %arg7: memref<2x8x128xf32, #tpu.memory_space<vmem>>) attributes {dimension_semantics = [#tpu.dimension_semantics<parallel>], iteration_bounds = array<i64: 2>, scalar_prefetch = 0 : i64, scratch_operands = 0 : i64, tpu.core_type = #tpu.core_type<tc>, window_params = [{transform_indices = @transform_0, window_bounds = array<i64: 2, 8, 128>}, {pipeline_mode = #tpu.pipeline_mode<synchronous>, transform_indices = @transform_1, window_bounds = array<i64: 8, 128>}, {pipeline_mode = #tpu.pipeline_mode<synchronous>, transform_indices = @transform_2, window_bounds = array<i64: 4, 8>}, {pipeline_mode = #tpu.pipeline_mode<synchronous>, transform_indices = @transform_3, window_bounds = array<i64: 4, 8>}, {pipeline_mode = #tpu.pipeline_mode<synchronous>, transform_indices = @transform_4, window_bounds = array<i64: 1, 128>}, {pipeline_mode = #tpu.pipeline_mode<synchronous>, transform_indices = @transform_5, window_bounds = array<i64: 1, 128>}, {transform_indices = @transform_6, window_bounds = array<i64: 2, 8, 128>}]} {
    %c2_i32 = arith.constant 2 : i32
    %0 = arith.muli %arg0, %c2_i32 : i32
    %1 = tpu.assume_multiple %0, 2 : i32
    %c0 = arith.constant 0 : index
    %c0_0 = arith.constant 0 : index
    %c0_1 = arith.constant 0 : index
    %2 = vector.load %arg1[%c0, %c0_0, %c0_1] : memref<2x8x128xbf16, #tpu.memory_space<vmem>>, vector<2x8x128xbf16>
    %3 = arith.extf %2 : vector<2x8x128xbf16> to vector<2x8x128xf32>
    %c0_2 = arith.constant 0 : index
    %c0_3 = arith.constant 0 : index
    %4 = vector.load %arg2[%c0_2, %c0_3] : memref<8x128xf32, #tpu.memory_space<vmem>>, vector<8x128xf32>
    %5 = vector.shape_cast %4 : vector<8x128xf32> to vector<1x8x128xf32>
    %6 = vector.broadcast %5 : vector<1x8x128xf32> to vector<2x8x128xf32>
    %7 = arith.addf %3, %6 : vector<2x8x128xf32>
    %8 = arith.index_cast %1 : i32 to index
    %c0_4 = arith.constant 0 : index
    %9 = vector.load %arg3[%8, %c0_4] : memref<4x8xf32, #tpu.memory_space<vmem>>, vector<2x8xf32>
    %10 = arith.index_cast %1 : i32 to index
    %c0_5 = arith.constant 0 : index
    %11 = vector.load %arg4[%10, %c0_5] : memref<4x8xf32, #tpu.memory_space<vmem>>, vector<2x8xf32>
    %12 = vector.shape_cast %9 : vector<2x8xf32> to vector<2x8x1xf32>
    %13 = vector.broadcast %12 : vector<2x8x1xf32> to vector<2x8x128xf32>
    %14 = arith.mulf %13, %7 : vector<2x8x128xf32>
    %cst = arith.constant dense<0.000000e+00> : vector<2x128xf32>
    %15 = vector.multi_reduction <add>, %14, %cst [1] : vector<2x8x128xf32> to vector<2x128xf32>
    %16 = vector.shape_cast %15 : vector<2x128xf32> to vector<2x1x128xf32>
    %17 = vector.shape_cast %11 : vector<2x8xf32> to vector<2x8x1xf32>
    %18 = vector.broadcast %17 : vector<2x8x1xf32> to vector<2x8x128xf32>
    %19 = vector.broadcast %16 : vector<2x1x128xf32> to vector<2x8x128xf32>
    %20 = arith.mulf %18, %19 : vector<2x8x128xf32>
    %21 = arith.addf %7, %20 : vector<2x8x128xf32>
    %cst_6 = arith.constant dense<0.000000e+00> : vector<2x8xf32>
    %22 = vector.multi_reduction <add>, %21, %cst_6 [2] : vector<2x8x128xf32> to vector<2x8xf32>
    %23 = vector.shape_cast %22 : vector<2x8xf32> to vector<2x8x1xf32>
    %cst_7 = arith.constant 7.812500e-03 : f32
    %24 = vector.broadcast %cst_7 : f32 to vector<2x8x1xf32>
    %25 = arith.mulf %23, %24 : vector<2x8x1xf32>
    %26 = vector.broadcast %25 : vector<2x8x1xf32> to vector<2x8x128xf32>
    %27 = arith.subf %21, %26 : vector<2x8x128xf32>
    %28 = arith.mulf %27, %27 : vector<2x8x128xf32>
    %cst_8 = arith.constant dense<0.000000e+00> : vector<2x8xf32>
    %29 = vector.multi_reduction <add>, %28, %cst_8 [2] : vector<2x8x128xf32> to vector<2x8xf32>
    %30 = vector.shape_cast %29 : vector<2x8xf32> to vector<2x8x1xf32>
    %cst_9 = arith.constant 7.812500e-03 : f32
    %31 = vector.broadcast %cst_9 : f32 to vector<2x8x1xf32>
    %32 = arith.mulf %30, %31 : vector<2x8x1xf32>
    %cst_10 = arith.constant 9.99999996E-13 : f32
    %33 = vector.broadcast %cst_10 : f32 to vector<2x8x1xf32>
    %34 = arith.addf %32, %33 : vector<2x8x1xf32>
    %35 = math.rsqrt %34 : vector<2x8x1xf32>
    %36 = vector.broadcast %35 : vector<2x8x1xf32> to vector<2x8x128xf32>
    %37 = arith.mulf %27, %36 : vector<2x8x128xf32>
    %c0_11 = arith.constant 0 : index
    %c0_12 = arith.constant 0 : index
    %38 = vector.load %arg5[%c0_11, %c0_12] : memref<1x128xf32, #tpu.memory_space<vmem>>, vector<1x128xf32>
    %39 = vector.shape_cast %38 : vector<1x128xf32> to vector<1x1x128xf32>
    %40 = vector.broadcast %39 : vector<1x1x128xf32> to vector<2x8x128xf32>
    %41 = arith.mulf %37, %40 : vector<2x8x128xf32>
    %c0_13 = arith.constant 0 : index
    %c0_14 = arith.constant 0 : index
    %42 = vector.load %arg6[%c0_13, %c0_14] : memref<1x128xf32, #tpu.memory_space<vmem>>, vector<1x128xf32>
    %43 = vector.shape_cast %42 : vector<1x128xf32> to vector<1x1x128xf32>
    %44 = vector.broadcast %43 : vector<1x1x128xf32> to vector<2x8x128xf32>
    %45 = arith.addf %41, %44 : vector<2x8x128xf32>
    %c0_15 = arith.constant 0 : index
    %c0_16 = arith.constant 0 : index
    %c0_17 = arith.constant 0 : index
    %46 = vector.load %arg7[%c0_15, %c0_16, %c0_17] : memref<2x8x128xf32, #tpu.memory_space<vmem>>, vector<2x8x128xf32>
    tpu.vector_store %arg7[%c0_15, %c0_16, %c0_17], %45 {strides = array<i32>} : memref<2x8x128xf32, #tpu.memory_space<vmem>>, vector<2x8x128xf32>,
    return
  }
  func.func @transform_0(%arg0: i32) -> (i32, i32, i32) {
    %c0_i32 = arith.constant 0 : i32
    %c0_i32_0 = arith.constant 0 : i32
    %c0_i32_1 = arith.constant 0 : i32
    return %arg0, %c0_i32, %c0_i32_0 : i32, i32, i32
  }
  func.func @transform_1(%arg0: i32) -> (i32, i32) {
    %c0_i32 = arith.constant 0 : i32
    %c0_i32_0 = arith.constant 0 : i32
    %c0_i32_1 = arith.constant 0 : i32
    return %c0_i32, %c0_i32_0 : i32, i32
  }
  func.func @transform_2(%arg0: i32) -> (i32, i32) {
    %c0_i32 = arith.constant 0 : i32
    %c0_i32_0 = arith.constant 0 : i32
    %c0_i32_1 = arith.constant 0 : i32
    return %c0_i32, %c0_i32_0 : i32, i32
  }
  func.func @transform_3(%arg0: i32) -> (i32, i32) {
    %c0_i32 = arith.constant 0 : i32
    %c0_i32_0 = arith.constant 0 : i32
    %c0_i32_1 = arith.constant 0 : i32
    return %c0_i32, %c0_i32_0 : i32, i32
  }
  func.func @transform_4(%arg0: i32) -> (i32, i32) {
    %c0_i32 = arith.constant 0 : i32
    %c0_i32_0 = arith.constant 0 : i32
    %c0_i32_1 = arith.constant 0 : i32
    return %c0_i32, %c0_i32_0 : i32, i32
  }
  func.func @transform_5(%arg0: i32) -> (i32, i32) {
    %c0_i32 = arith.constant 0 : i32
    %c0_i32_0 = arith.constant 0 : i32
    %c0_i32_1 = arith.constant 0 : i32
    return %c0_i32, %c0_i32_0 : i32, i32
  }
  func.func @transform_6(%arg0: i32) -> (i32, i32, i32) {
    %c0_i32 = arith.constant 0 : i32
    %c0_i32_0 = arith.constant 0 : i32
    %c0_i32_1 = arith.constant 0 : i32
    return %arg0, %c0_i32, %c0_i32_0 : i32, i32, i32
  }
}

</mosaic_0001>

<bundles_post_ra>
// kernel: tpu_custom_call.1
= control target key start
LH: loop header
LB: loop body
LE: loop exit
PB: predicated region body
PF: predicated region fallthrough
CT: control target
= control target key end

     0   :  { %11 = vsyncpa [#allocation3], 0  ;;  %s1005_s0 = inlined_call_operand.hbm [shape: bf16[4,8,128], index: 0, kind: input, shape index: {}]   ;;  %s1006_s1 = inlined_call_operand.hbm [shape: f32[8,128], index: 1, kind: input, shape index: {}]   ;;  %s1007_s2 = inlined_call_operand.hbm [shape: f32[4,8], index: 2, kind: input, shape index: {}]   ;;  %s1008_s3 = inlined_call_operand.vmem [shape: f32[4,8], index: 3, kind: input, shape index: {}]   ;;  %s1009_s4 = inlined_call_operand.vmem [shape: f32[1,128], index: 4, kind: input, shape index: {}]   ;;  %s1010_s5 = inlined_call_operand.vmem [shape: f32[1,128], index: 5, kind: input, shape index: {}]   ;;  %s1011_s6 = inlined_call_operand.hbm [shape: f32[4,8,128], index: 6, kind: output, shape index: {}]  }
   0x1   :  { %13 = vsyncpa [#allocation3 + $0x1], 0 }
   0x2   :  { %14 = vsyncpa [#allocation6], 0 }
   0x3   :  { %15 = vsyncpa [#allocation4], 0 }
   0x4   :  { %17 = vsyncpa [#allocation4 + $0x1], 0  ;;  %s802_s21 = smov 0   ;;  %s804_s22 = smov 0  }
   0x5   :  { %s806_s23 = smov 0   ;;  %s808_s24 = smov 0  }
   0x6 LB: > { %s823_s25 = sadd.s32 4294967295, %s757_s24   ;;  %s507_s26 = sadd.s32 4294967294, %s757_s24   ;;  %s757_s24 = sphi %s808_s24, %s1034_s24   ;;  %s753_s23 = sphi %s806_s23, %s1033_s23   ;;  %s749_s22 = sphi %s804_s22, %s1032_s22   ;;  %s745_s21 = sphi %s802_s21, %s1031_s21  }
   0x7   : > { %s827_s27 = sadd.s32 1, %s757_s24   ;;  %s30_s28 = sadd.s32 1, %s753_s23 }
   0x8   : > { %s27_s29 = ssub.s32 %s757_s24, %s827_s27  ;;  %p37_p0 = scmp.ne.s32.totalorder %s753_s23, %s749_s22 }
   0x9   : > { %p28_p1 = scmp.eq.s32.totalorder %s27_s29, 0  ;;  %p38_p2 = scmp.eq.s32.totalorder %s757_s24, 0 }
   0xa   : > { %p43_p3 = scmp.ne.s32.totalorder %s749_s22, %s745_s21  ;;  %p1012_p4 = scmp.eq.s32.totalorder %s823_s25, 0 }
   0xb   : > { %s839_s30 = scalar_select %p28_p1, %s753_s23, %s30_s28  }
   0xc   : > { %p841_p5 = por %p38_p2, %p37_p0  ;;  %p847_p6 = por %p1012_p4, %p43_p3 }
   0xd   : > { %p172_p7 = scmp.eq.s32.totalorder %s823_s25, 1  ;;  %p178_p8 = scmp.eq.s32.totalorder %s507_s26, 1 }
   0xe   : > { %s1017_s8 = scalar_select %p847_p6, 1, 0 }
   0xf   : > { %p508_p9 = scmp.ge.s32.totalorder %s757_s24, 1  ;;  %p185_p10 = scmp.lt.s32.totalorder %s757_s24, 3 }
  0x10   : > { %p854_p11 = por %p172_p7, %p37_p0  ;;  %p858_p12 = por %p178_p8, %p43_p3 }
  0x11   : > { %p862_p13 = pnand %p508_p9, %p185_p10  ;;  %s759_s12 = smov [#allocation5]  }
  0x12   : > { %s1018_s9 = scalar_select %p854_p11, 1, 0 }
  0x13   : > { %s1019_s10 = scalar_select %p858_p12, 1, 0 }
  0x14   : > { %s1020_s11 = scalar_select %p862_p13, 1, 0 }
  0x15   : > { %p546_p2 = pneg %p862_p13  ;;  %s198_s13 = sshll.u32 %s759_s12, 4  ;;  %s199_s13 = int_to_ptr.vmem [resolvable:$true] %s198_s13 }
  0x16   : > { %p563_p4 = scmp.lt.s32.totalorder %s757_s24, 2  ;;  %p1021_p0 = scmp.eq.s32.totalorder %s823_s25, 0 }
  0x17   : > { %s760_s16 = smov [#allocation7]   ;;  %s620_s18 = scalar_lea.vmem %s199_s13, 128 }
  0x18   : > { %p872_p7 = pnand %p546_p2, %p1021_p0  ;;  %p878_p3 = pnand %p563_p4, %p841_p5 }
  0x19   : > { %s209_s17 = sshll.u32 %s760_s16, 4  ;;  %p621_p9 = scmp.ne.s32.totalorder %s199_s13, %s620_s18  ;;  %s210_s17 = int_to_ptr.vmem [resolvable:$true] %s209_s17 }
  0x1a   : > { %p611_p8 = pneg %p872_p7  ;;  %p628_p0 = scmp.lt.s32.totalorder %s199_s13, %s199_s13 }
  0x1b   : > { %p629_p1 = scmp.lt.s32.totalorder %s620_s18, %s620_s18 }
  0x1c   : > { %p623_p10 = pnand %p621_p9, %p611_p8 }
  0x1d   : > { %p630_p12 = por %p629_p1, %p628_p0 }
  0x1e   : > { %p624_p2 = pneg %p623_p10 }
  0x20   : > { %p631_p11 = pnand %p630_p12, %p624_p2 }
  0x22   : > { %634 = shalt.err (!%p631_p11)
}
  0x23   : > { %549 = dma.hbm_to_vmem [thread:$0]  (!%p872_p7), %s1006_s1, 128, %s199_s13, [#allocation6]  }
  0x24   : > { %s229_s26 = sand.u32 1, %s753_s23   ;;  %s646_s28 = scalar_lea.vmem %s210_s17, 64 }
  0x25   : > { %p647_p4 = scmp.ne.s32.totalorder %s210_s17, %s646_s28  ;;  %p654_p10 = scmp.lt.s32.totalorder %s210_s17, %s210_s17 }
  0x26   : > { %p655_p6 = scmp.lt.s32.totalorder %s646_s28, %s646_s28 }
  0x27   : > { %p649_p5 = pnand %p647_p4, %p611_p8 }
  0x28   : > { %p656_p1 = por %p655_p6, %p654_p10 }
  0x29   : > { %p650_p9 = pneg %p649_p5 }
  0x2b   : > { %p657_p12 = pnand %p656_p1, %p650_p9 }
  0x2d   : > { %660 = shalt.err (!%p657_p12)
}
  0x2e   : > { %552 = dma.hbm_to_vmem [thread:$0]  (!%p872_p7), %s1007_s2, 64, %s210_s17, [#allocation6]  }
  0x2f   : > { %s512_s12 = sshll.u32 %s229_s26, 3  ;;  %s528_s13 = sshll.u32 %s757_s24, 7 }
  0x30   : > { %s905_s19 = scalar_lea.hbm %s1005_s0, %s528_s13  ;;  %s233_s20 = scalar_lea.vmem [#allocation2], %s512_s12 }
  0x31   : > { %s240_s28 = sshll.u32 %s233_s20, 4  ;;  %s909_s14 = scalar_lea.sflag [#allocation3], %s229_s26  ;;  %s907_s28 = int_to_ptr.vmem [resolvable:$true] %s240_s28 }
  0x32   : > { %s661_s29 = scalar_lea.hbm %s905_s19, 128  ;;  %p663_p11 = pneg %p878_p3 }
  0x33   : > { %p662_p6 = scmp.ne.s32.totalorder %s905_s19, %s661_s29  ;;  %s666_s13 = scalar_lea.hbm %s1005_s0, 256 }
  0x34   : > { %p667_p2 = scmp.lt.s32.totalorder %s905_s19, %s1005_s0  ;;  %p668_p0 = scmp.lt.s32.totalorder %s666_s13, %s661_s29 }
  0x35   : > { %p664_p7 = pnand %p663_p11, %p662_p6 }
  0x36   : > { %p669_p4 = por %p668_p0, %p667_p2 }
  0x37   : > { %p665_p8 = pneg %p664_p7 }
  0x39   : > { %p670_p5 = pnand %p669_p4, %p665_p8 }
  0x3b   : > { %673 = shalt.err (!%p670_p5)
}
  0x3c   : > { %s674_s26 = scalar_lea.vmem %s907_s28, 128  ;;  %s761_s12 = smov [#allocation2]  }
  0x3d   : > { %p675_p9 = scmp.ne.s32.totalorder %s907_s28, %s674_s26  ;;  %s679_s20 = sshll.u32 %s761_s12, 4  ;;  %s680_s20 = int_to_ptr.vmem [resolvable:$false] %s679_s20 }
  0x3e   : > { %s681_s17 = scalar_lea.vmem %s680_s20, 256  ;;  %p682_p12 = scmp.lt.s32.totalorder %s907_s28, %s680_s20 }
  0x3f   : > { %p677_p10 = pnand %p675_p9, %p663_p11  ;;  %p683_p6 = scmp.lt.s32.totalorder %s681_s17, %s674_s26 }
  0x41   : > { %p678_p1 = pneg %p677_p10  ;;  %p684_p7 = por %p683_p6, %p682_p12 }
  0x43   : > { %p685_p13 = pnand %p684_p7, %p678_p1 }
  0x45   : > { %688 = shalt.err (!%p685_p13)
}
  0x46   : > { %s762_s29 = smov 64   ;;  %s763_s7 = smov 4  }
  0x47   : > { %556 = dma.hbm_to_vmem [thread:$0]  (!%p878_p3), %s905_s19, 128, %s907_s28, %s909_s14, %s762_s29, %s762_s29, %s763_s7  }
  0x48   : > { %p1024_p11 = scmp.ne.s32.totalorder %s1020_s11, 0 }
  0x49   : > { %s933_s13 = sand.u32 (!%p1024_p11), 1, %s749_s22   ;;  %p1025_p13 = scmp.ne.s32.totalorder (!%p1024_p11), %s1017_s8, 0 }
  0x4a   : > { %252 = sbr.rel (%p1024_p11) target bundleno = 548 (0x224), region = 44  ;;  %s516_s16 = sshll.u32 (!%p1024_p11), %s933_s13, 3 }
  0x4b   : > { %s255_s18 = scalar_lea.sflag (!%p1024_p11), [#allocation3], %s933_s13  ;;  %s258_s26 = scalar_lea.vmem (!%p1024_p11), [#allocation2], %s516_s16 }
  0x4f   : > { %732 = dma.done.wait (%p1025_p13), %s255_s18, 128  }
  0x50   : > { %734 = vsyncadd (%p1025_p13), %s255_s18, 4294967168  ;;  %p1026_p8 = scmp.eq.s32.totalorder %s823_s25, 0 }
  0x52   : > { %736 = dma.done.wait (%p1026_p8), [#allocation6], 192   ;;  %p1027_p3 = pmov %p1026_p8 }
  0x53   : > { %v309_v0 = vlaneseq  ;;  %s520_s11 = sshll.u32 %s823_s25, 1  ;;  %v531_v10 = vld [vmem:[%s258_s26] sm:$0xff]   ;;  %v302_v12 = vld [vmem:[#allocation5] sm:$0xff]  ;;  %s519_s20 = sshll.u32 %s933_s13, 4 }
  0x54   : > { %738 = vsyncadd (%p1027_p3), [#allocation6], 4294967104  ;;  %s307_s28 = scalar_lea.vmem %s1008_s3, %s520_s11  ;;  %s305_s14 = scalar_lea.vmem [#allocation7], %s520_s11  ;;  %v532_v11 = vunpack.c.l.bf16 %v531_v10  ;;  %v533_v14 = vunpack.c.h.bf16 %v531_v10  ;;  %v521_v53 = vld [vmem:[%s1009_s4] ss:$0 sm:$0xff] }
  0x55   : > { %v310_v1 = vshrl.u32 %v309_v0, 7  ;;  %v306_v4 = vld [vmem:[%s305_s14] sm:$0x3]  ;;  %s529_s7 = sshll.u32 %s823_s25, 8  ;;  %s294_s16 = scalar_lea.vmem [#allocation8], %s519_s20 }
  0x56   : > { %v308_v5 = vld [vmem:[%s307_s28] sm:$0x3]  ;;  %v303_v13 = vadd.f32 %v532_v11, %v302_v12  ;;  %v304_v17 = vadd.f32 %v533_v14, %v302_v12  ;;  %s411_s18 = sshll.u32 %s294_s16, 4  ;;  %s960_s15 = scalar_lea.hbm %s1011_s6, %s529_s7  ;;  %s962_s18 = int_to_ptr.vmem [resolvable:$true] %s411_s18 }
  0x57   : > { %v311_v2 = vsub.s32 0, %v310_v1  ;;  %v318_v3 = vsub.s32 1, %v310_v1  ;;  %v522_v55 = vld [vmem:[%s1010_s5] ss:$0 sm:$0xff]  ;;  %s398_s19 = scalar_lea.sflag [#allocation4], %s933_s13  ;;  %s689_s28 = scalar_lea.vmem %s962_s18, 256 }
  0x58   : > { %p690_p2 = scmp.ne.s32.totalorder %s962_s18, %s689_s28  ;;  %p1028_p0 = scmp.ne.s32.totalorder %s1018_s9, 0 }
  0x59   : > { %v312_v6 = vrot.slane %v306_v4, %v311_v2  ;;  %v340_v7 = vrot.slane %v308_v5, %v311_v2  ;;  %v319_v8 = vrot.slane %v306_v4, %v318_v3  ;;  %v347_v9 = vrot.slane %v308_v5, %v318_v3  ;;  %s764_s25 = smov [#allocation8]  }
  0x5a   : > { %p691_p4 = pnand %p690_p2, %p1028_p0  ;;  %s693_s14 = sshll.u32 %s764_s25, 4  ;;  %s694_s14 = int_to_ptr.vmem [resolvable:$false] %s693_s14 }
  0x5b   : > { %314 = vbcast.lane.b32.xlu0 %v312_v6, 256  ;;  %342 = vbcast.lane.b32.xlu1 %v340_v7, 256  ;;  %s695_s8 = scalar_lea.vmem %s694_s14, 512  ;;  %p696_p9 = scmp.lt.s32.totalorder %s962_s18, %s694_s14 }
  0x5c   : > { %p692_p5 = pneg %p691_p4  ;;  %p697_p10 = scmp.lt.s32.totalorder %s695_s8, %s689_s28 }
  0x5e   : > { %p698_p1 = por %p697_p10, %p696_p9 }
  0x5f   : > { %321 = vbcast.lane.b32.xlu0 %v319_v8, 256  ;;  %349 = vbcast.lane.b32.xlu1 %v347_v9, 256 }
  0x60   : > { %p699_p12 = pnand %p698_p1, %p692_p5 }
  0xcd   : > { %v315_v15 = vpop.permute.xlu0 %314  ;;  %v343_v26 = vpop.permute.xlu1 %342 }
  0xce   : > { %v323_v16 = vmul.f32 %v315_v15, %v303_v13 }
  0xd0   : > { %v325_v18 = vrot.slane %v323_v16, 4 }
  0xd1   : > { %v322_v19 = vpop.permute.xlu0 %321  ;;  %v350_v33 = vpop.permute.xlu1 %349 }
  0xd2   : > { %v326_v20 = vadd.f32 %v325_v18, %v323_v16  ;;  %v324_v21 = vmul.f32 %v322_v19, %v304_v17 }
  0xd4   : > { %v327_v22 = vrot.slane %v326_v20, 2  ;;  %v331_v23 = vrot.slane %v324_v21, 4 }
  0xd6   : > { %v332_v24 = vadd.f32 %v331_v23, %v324_v21  ;;  %v328_v25 = vadd.f32 %v327_v22, %v326_v20 }
  0xd8   : > { %v333_v27 = vrot.slane %v332_v24, 2  ;;  %v329_v28 = vrot.slane %v328_v25, 1 }
  0xda   : > { %v330_v29 = vadd.f32 %v329_v28, %v328_v25  ;;  %v334_v30 = vadd.f32 %v333_v27, %v332_v24 }
  0xdc   : > { %v351_v31 = vmul.f32 %v343_v26, %v330_v29  ;;  %v335_v32 = vrot.slane %v334_v30, 1 }
  0xde   : > { %v336_v34 = vadd.f32 %v335_v32, %v334_v30  ;;  %v353_v35 = vadd.f32 %v351_v31, %v303_v13 }
  0xe0   : > { %v352_v36 = vmul.f32 %v350_v33, %v336_v34  ;;  %355 = vadd.xlane.f32.xlu0 %v353_v35 }
  0xe2   : > { %v354_v37 = vadd.f32 %v352_v36, %v304_v17 }
  0xe4   : > { %357 = vadd.xlane.f32.xlu1 %v354_v37 }
 0x169   : > { %v356_v38 = vpop.xlane.xlu0 %355 }
 0x16a   : > { %v359_v39 = vmul.f32 0.0078125, %v356_v38 }
 0x16c   : > { %v361_v40 = vsub.f32 %v353_v35, %v359_v39 }
 0x16d   : > { %v358_v41 = vpop.xlane.xlu1 %357 }
 0x16e   : > { %v360_v42 = vmul.f32 0.0078125, %v358_v41  ;;  %v363_v43 = vmul.f32 %v361_v40, %v361_v40 }
 0x170   : > { %v362_v44 = vsub.f32 %v354_v37, %v360_v42  ;;  %365 = vadd.xlane.f32.xlu0 %v363_v43 }
 0x172   : > { %v364_v45 = vmul.f32 %v362_v44, %v362_v44 }
 0x174   : > { %367 = vadd.xlane.f32.xlu0 %v364_v45 }
 0x1f9   : > { %v366_v46 = vpop.xlane.xlu0 %365 }
 0x1fa   : > { %v369_v47 = vmul.f32 0.0078125, %v366_v46 }
 0x1fc   : > { %v371_v48 = vadd.f32 1e-12, %v369_v47 }
 0x1fd   : > { %v368_v49 = vpop.xlane.xlu0 %367 }
 0x1fe   : > { %605 = vrsqrt.f32 %v371_v48  ;;  %v370_v50 = vmul.f32 0.0078125, %v368_v49 }
 0x200   : > { %v372_v51 = vadd.f32 1e-12, %v370_v50 }
 0x202   : > { %607 = vrsqrt.f32 %v372_v51 }
 0x20b   : > { %v606_v52 = vpop.eup %605 }
 0x20c   : > { %v375_v54 = vmul.f32 %v606_v52, %v361_v40 }
 0x20e   : > { %v384_v56 = vmul.f32 %v521_v53, %v375_v54 }
 0x20f   : > { %v608_v57 = vpop.eup %607 }
 0x210   : > { %v393_v58 = vadd.f32 %v522_v55, %v384_v56  ;;  %v376_v59 = vmul.f32 %v608_v57, %v362_v44 }
 0x212   : > { %v385_v60 = vmul.f32 %v521_v53, %v376_v59  ;;  %395 = vst [vmem:[%s294_s16] sm:$0xff] %v393_v58 }
 0x214   : > { %v394_v61 = vadd.f32 %v522_v55, %v385_v60 }
 0x216   : > { %396 = vst [vmem:[%s294_s16 + $0x8] sm:$0xff] %v394_v61 }
 0x217   : > { %702 = shalt.err (!%p699_p12)
}
 0x218   : > { %s703_s12 = scalar_lea.hbm %s960_s15, 256  ;;  %s707_s29 = scalar_lea.hbm %s1011_s6, 512 }
 0x219   : > { %p704_p6 = scmp.ne.s32.totalorder %s960_s15, %s703_s12  ;;  %p708_p13 = scmp.lt.s32.totalorder %s960_s15, %s1011_s6 }
 0x21a   : > { %p709_p8 = scmp.lt.s32.totalorder %s707_s29, %s703_s12 }
 0x21b   : > { %p705_p7 = pnand %p704_p6, %p1028_p0 }
 0x21c   : > { %p710_p3 = por %p709_p8, %p708_p13 }
 0x21d   : > { %p706_p11 = pneg %p705_p7 }
 0x21f   : > { %p711_p2 = pnand %p710_p3, %p706_p11 }
 0x221   : > { %714 = shalt.err (!%p711_p2)
}
 0x222   : > { %s765_s26 = smov 128   ;;  %s766_s11 = smov 8  }
 0x223   : > { %544 = dma.vmem_to_hbm [thread:$0]  (%p1028_p0), %s962_s18, 256, %s960_s15, %s398_s19, %s765_s26, %s765_s26, %s766_s11  }
 0x224 PF: > { %s426_s28 = sand.u32 1, %s745_s21   ;;  %p1029_p4 = scmp.ne.s32.totalorder %s1019_s10, 0 }
 0x225   : > { %p1030_p5 = scmp.ge.s32.totalorder %s757_s24, 2  ;;  %s427_s25 = scalar_lea.sflag [#allocation4], %s426_s28 }
 0x227   : > { %p558_p9 = pnand %p1030_p5, %p1029_p4 }
 0x229   : > { %p559_p10 = pneg %p558_p9 }
 0x22b   : > { %740 = dma.done.wait (%p559_p10), %s427_s25, 256  }
 0x22c   : > { %742 = vsyncadd (%p559_p10), %s427_s25, 4294967040  ;;  %p20_p1 = scmp.ge.s32.totalorder %s827_s27, 4   ;;  %s1031_s21 = smov %s749_s22 }
 0x22d   : > { %s1032_s22 = smov %s753_s23  ;;  %s1033_s23 = smov %s839_s30 }
 0x22e   : > { %s1034_s24 = smov %s827_s27  ;;  %22 = sbr.rel (!%p20_p1) target bundleno = 6 (0x6), region = 99 }
 0x233   :  { %432 = vsyncpa [#allocation3], 1 }
 0x234   :  { %434 = vsyncpa [#allocation3 + $0x1], 1 }
 0x235   :  { %435 = vsyncpa [#allocation6], 1 }
 0x236   :  { %436 = vsyncpa [#allocation4], 1 }
 0x237   :  { %438 = vsyncpa [#allocation4 + $0x1], 1 }

</bundles_post_ra>
